<compile_context>
chip_gen: v7x
topology: tpu7x:2x2x1
jax: 0.10.0
libtpu: 0.0.40
codegen_flags: <defaults>
</compile_context>

<pallas_src>
import jax
import jax.numpy as jnp
from jax.experimental import pallas as pl
from jax.experimental.pallas import tpu as pltpu

IN_FEATURES = 28 * 28   # 784
OUT_FEATURES = 10
N_PAD = 128             # lane-dense padded weight width (MXU-aligned N)


def _round_up(v, m):
    return ((v + m - 1) // m) * m


def _choose_tm(b):
    """Batch tile size.

    Tiny B: one 8-rounded tile (per-step overhead would dominate otherwise).
    Larger B: split the batch in half first so the grid has >= 2 steps and the
    "parallel" axis can shard across both v7x TensorCores (harmless extra
    ~0.35us step on 1-TC v5e/v6e), then cap at 1024 rows so the
    double-buffered x working set (~6.4 MB) fits every generation's default
    scoped VMEM.
    """
    if b <= 16:
        return _round_up(b, 8)
    half = -(-b // 2)                       # cdiv(b, 2)
    return min(_round_up(half, 8), 1024)


def _linear_kernel(x_ref, w_ref, b_ref, o_ref):
    # x_ref: (TM, 784)  w_ref: (784, 128)  b_ref: (1, 128)  o_ref: (TM, 10)
    acc = jnp.dot(x_ref[...], w_ref[...], preferred_element_type=jnp.float32)
    acc = acc + b_ref[...]
    # Only the first 10 lanes carry real features; writing (TM, 10) avoids the
    # 12.8x padded writeback, and the masked store cost is hidden by slack.
    o_ref[...] = acc[:, :OUT_FEATURES].astype(o_ref.dtype)


def prepare_params(weight, bias):
    """One-time prep (hoisted out of the forward): W^T and bias scattered into
    lane-dense 128-wide zero buffers so no per-call transpose/pad traffic."""
    w_pad = jnp.zeros((IN_FEATURES, N_PAD), dtype=weight.dtype)
    w_pad = w_pad.at[:, :OUT_FEATURES].set(weight.T)
    b_pad = jnp.zeros((1, N_PAD), dtype=bias.dtype)
    b_pad = b_pad.at[0, :OUT_FEATURES].set(bias)
    return w_pad, b_pad


def basic_nn_forward(x, w_pad, b_pad):
    """x: (B, 1, 28, 28); w_pad: (784, 128); b_pad: (1, 128) -> (B, 10)."""
    b = x.shape[0]
    if b == 0:                               # guard: empty grid otherwise
        return jnp.zeros((0, OUT_FEATURES), dtype=x.dtype)

    x2d = x.reshape(b, -1)                   # glue: torch .view(batch, -1)

    tm = _choose_tm(b)
    grid = (pl.cdiv(b, tm),)                 # partial last tile, no jnp.pad

    itm = jnp.dtype(x.dtype).itemsize
    cost = pl.CostEstimate(
        flops=2 * b * IN_FEATURES * N_PAD,
        transcendentals=0,
        bytes_accessed=(b * IN_FEATURES * itm
                        + IN_FEATURES * N_PAD * jnp.dtype(w_pad.dtype).itemsize
                        + b * OUT_FEATURES * itm),
    )

    out = pl.pallas_call(
        _linear_kernel,
        out_shape=jax.ShapeDtypeStruct((b, OUT_FEATURES), x.dtype),
        grid_spec=pltpu.PrefetchScalarGridSpec(
            num_scalar_prefetch=0,
            grid=grid,
            in_specs=[
                # x tile: pipelined HBM->VMEM DMA, double-buffered by Pallas.
                pl.BlockSpec((tm, IN_FEATURES), lambda i: (i, 0)),
                # Weight / bias: VMEM-resident across all grid steps.
                pl.BlockSpec((IN_FEATURES, N_PAD), lambda i: (0, 0)),
                pl.BlockSpec((1, N_PAD), lambda i: (0, 0)),
            ],
            out_specs=pl.BlockSpec((tm, OUT_FEATURES), lambda i: (i, 0)),
        ),
        compiler_params=pltpu.CompilerParams(
            dimension_semantics=("parallel",)),
        cost_estimate=cost,
    )(x2d, w_pad, b_pad)

    return out


def init_params(key):
    """Deterministic init matching nn.Linear default bounds U[-1/sqrt(fan_in), +]."""
    kw, kb = jax.random.split(key)
    bound = 1.0 / (IN_FEATURES ** 0.5)
    weight = jax.random.uniform(
        kw, (OUT_FEATURES, IN_FEATURES), jnp.float32, -bound, bound)
    bias = jax.random.uniform(
        kb, (OUT_FEATURES,), jnp.float32, -bound, bound)
    return weight, bias


if __name__ == "__main__":
    key = jax.random.PRNGKey(0)
    kx, kp = jax.random.split(key)

    batch = 2
    x = jax.random.normal(kx, (batch, 1, 28, 28), jnp.float32)   # NCHW
    weight, bias = init_params(kp)

    # One-time parameter prep (hoisted out of the per-call path).
    w_pad, b_pad = prepare_params(weight, bias)
    w_pad, b_pad = jax.block_until_ready((w_pad, b_pad))

    out = basic_nn_forward(x, w_pad, b_pad)
    out = jax.block_until_ready(out)

    # Correctness check against plain-JAX reference of the same math.
    ref = x.reshape(batch, -1) @ weight.T + bias
    assert out.shape == (batch, OUT_FEATURES)
    assert jnp.allclose(out, ref, atol=1e-5, rtol=1e-5)

    print("KERNEL_OK")
</pallas_src>

<mosaic_0001>
module attributes {stable_mosaic.version = 11 : i64} {
  func.func @_linear_kernel(%arg0: i32, %arg1: memref<8x784xf32, #tpu.memory_space<vmem>>, %arg2: memref<784x128xf32, #tpu.memory_space<vmem>>, %arg3: memref<1x128xf32, #tpu.memory_space<vmem>>, %arg4: memref<8x10xf32, #tpu.memory_space<vmem>>) attributes {dimension_semantics = [#tpu.dimension_semantics<parallel>], iteration_bounds = array<i64: 1>, scalar_prefetch = 0 : i64, scratch_operands = 0 : i64, tpu.core_type = #tpu.core_type<tc>, window_params = [{transform_indices = @transform_0, window_bounds = array<i64: 8, 784>}, {pipeline_mode = #tpu.pipeline_mode<synchronous>, transform_indices = @transform_1, window_bounds = array<i64: 784, 128>}, {pipeline_mode = #tpu.pipeline_mode<synchronous>, transform_indices = @transform_2, window_bounds = array<i64: 1, 128>}, {transform_indices = @transform_3, window_bounds = array<i64: 8, 10>}]} {
    %c0 = arith.constant 0 : index
    %c0_0 = arith.constant 0 : index
    %0 = vector.load %arg1[%c0, %c0_0] : memref<8x784xf32, #tpu.memory_space<vmem>>, vector<8x784xf32>
    %c0_1 = arith.constant 0 : index
    %c0_2 = arith.constant 0 : index
    %1 = vector.load %arg2[%c0_1, %c0_2] : memref<784x128xf32, #tpu.memory_space<vmem>>, vector<784x128xf32>
    %cst = arith.constant dense<0.000000e+00> : vector<8x128xf32>
    %2 = tpu.matmul %0, %1, %cst {dimension_numbers = #tpu.dot_dimension_numbers<[1], [0], [0], [1], [0, 0, 1, 1], [], []>} : vector<8x784xf32>, vector<784x128xf32>, vector<8x128xf32> -> vector<8x128xf32>
    %c0_3 = arith.constant 0 : index
    %c0_4 = arith.constant 0 : index
    %3 = vector.load %arg3[%c0_3, %c0_4] : memref<1x128xf32, #tpu.memory_space<vmem>>, vector<1x128xf32>
    %4 = vector.broadcast %3 : vector<1x128xf32> to vector<8x128xf32>
    %5 = arith.addf %2, %4 : vector<8x128xf32>
    %6 = vector.extract_strided_slice %5 {offsets = [0, 0], sizes = [8, 10], strides = [1, 1]} : vector<8x128xf32> to vector<8x10xf32>
    %c0_5 = arith.constant 0 : index
    %c0_6 = arith.constant 0 : index
    %7 = vector.load %arg4[%c0_5, %c0_6] : memref<8x10xf32, #tpu.memory_space<vmem>>, vector<8x10xf32>
    tpu.vector_store %arg4[%c0_5, %c0_6], %6 {strides = array<i32>} : memref<8x10xf32, #tpu.memory_space<vmem>>, vector<8x10xf32>,
    return
  }
  func.func @transform_0(%arg0: i32) -> (i32, i32) {
    %c0_i32 = arith.constant 0 : i32
    %c0_i32_0 = arith.constant 0 : i32
    return %arg0, %c0_i32 : i32, i32
  }
  func.func @transform_1(%arg0: i32) -> (i32, i32) {
    %c0_i32 = arith.constant 0 : i32
    %c0_i32_0 = arith.constant 0 : i32
    %c0_i32_1 = arith.constant 0 : i32
    return %c0_i32, %c0_i32_0 : i32, i32
  }
  func.func @transform_2(%arg0: i32) -> (i32, i32) {
    %c0_i32 = arith.constant 0 : i32
    %c0_i32_0 = arith.constant 0 : i32
    %c0_i32_1 = arith.constant 0 : i32
    return %c0_i32, %c0_i32_0 : i32, i32
  }
  func.func @transform_3(%arg0: i32) -> (i32, i32) {
    %c0_i32 = arith.constant 0 : i32
    %c0_i32_0 = arith.constant 0 : i32
    return %arg0, %c0_i32 : i32, i32
  }
}

</mosaic_0001>

<bundles_post_ra>
// kernel: tpu_custom_call.1
= control target key start
LH: loop header
LB: loop body
LE: loop exit
PB: predicated region body
PF: predicated region fallthrough
CT: control target
= control target key end

     0   :  { %8 = vsyncpa [#allocation3], 0  ;;  %s939_s0 = inlined_call_operand.hbm [shape: f32[2,784], index: 0, kind: input, shape index: {}]   ;;  %s940_s1 = inlined_call_operand.hbm [shape: f32[784,128], index: 1, kind: input, shape index: {}]   ;;  %s941_s2 = inlined_call_operand.vmem [shape: f32[1,128], index: 2, kind: input, shape index: {}]   ;;  %s942_s3 = inlined_call_operand.hbm [shape: f32[2,10], index: 3, kind: output, shape index: {}]  }
   0x1   :  { %9 = vsyncpa [#allocation6], 0 }
   0x2   :  { %10 = vsyncpa [#allocation4], 0 }
   0x3   :  { %15 = vsyncadd [#allocation3], 672  ;;  %s857_s12 = smov [#allocation2]   ;;  %s785_s16 = scalar_lea.hbm %s939_s0, 224 }
   0x4   :  { %s16_s13 = sshll.u32 %s857_s12, 4  ;;  %p786_p0 = scmp.ne.s32.totalorder %s939_s0, %s785_s16  ;;  %s17_s13 = int_to_ptr.vmem [resolvable:$true] %s16_s13 }
   0x5   :  { %p789_p1 = scmp.lt.u32.totalorder %s785_s16, %s939_s0 }
   0x7   :  { %p791_p2 = pnand %p789_p1, %p786_p0 }
   0x9   :  { %794 = shalt.err (!%p791_p2)
}
   0xa   :  { %s795_s21 = scalar_lea.vmem %s17_s13, 224  ;;  %s799_s22 = scalar_lea.vmem %s17_s13, 896 }
   0xb   :  { %p796_p3 = scmp.ne.s32.totalorder %s17_s13, %s795_s21  ;;  %p800_p4 = scmp.lt.s32.totalorder %s17_s13, %s17_s13 }
   0xc   :  { %p801_p5 = scmp.lt.s32.totalorder %s799_s22, %s795_s21 }
   0xe   :  { %p802_p6 = por %p801_p5, %p800_p4 }
  0x10   :  { %p803_p7 = pnand %p802_p6, %p796_p3 }
  0x12   :  { %806 = shalt.err (!%p803_p7)
}
  0x13   :  { %s858_s23 = smov 224   ;;  %s859_s24 = smov 14  }
  0x14   :  { %22 = dma.hbm_to_vmem [thread:$0]  %s939_s0, 224, %s17_s13, [#allocation3], %s858_s23, %s858_s23, %s859_s24  }
  0x15   :  { %s860_s27 = smov [#allocation5]   ;;  %s807_s4 = scalar_lea.hbm %s940_s1, 12544 }
  0x16   :  { %s28_s28 = sshll.u32 %s860_s27, 4  ;;  %p808_p8 = scmp.ne.s32.totalorder %s940_s1, %s807_s4  ;;  %s29_s28 = int_to_ptr.vmem [resolvable:$true] %s28_s28 }
  0x17   :  { %p811_p9 = scmp.lt.u32.totalorder %s807_s4, %s940_s1 }
  0x19   :  { %p813_p10 = pnand %p811_p9, %p808_p8 }
  0x1b   :  { %816 = shalt.err (!%p813_p10)
}
  0x1c   :  { %s817_s9 = scalar_lea.vmem %s29_s28, 12544  ;;  %p822_p12 = scmp.lt.s32.totalorder %s29_s28, %s29_s28 }
  0x1d   :  { %p818_p11 = scmp.ne.s32.totalorder %s29_s28, %s817_s9  ;;  %p823_p13 = scmp.lt.s32.totalorder %s817_s9, %s817_s9 }
  0x1f   :  { %p824_p0 = por %p823_p13, %p822_p12 }
  0x21   :  { %p825_p1 = pnand %p824_p0, %p818_p11 }
  0x23   :  { %828 = shalt.err (!%p825_p1)
}
  0x24   :  { %s861_s0 = smov 128   ;;  %s862_s10 = smov 8  }
  0x25   :  { %34 = dma.hbm_to_vmem [thread:$0]  %s940_s1, 12544, %s29_s28, [#allocation6], %s861_s0, %s861_s0, %s862_s10  }
  0x26   :  { %851 = dma.done.wait [#allocation3], 896  }
  0x27   :  { %852 = vsyncadd [#allocation3], 4294966400 }
  0x28   :  { %853 = dma.done.wait [#allocation6], 12544  }
  0x29   :  { %854 = vsyncadd [#allocation6], 4294954752  ;;  %v67_v0 = vld [vmem:[#allocation5 + $0x80] sm:$0xff]  ;;  %v68_v1 = vld [vmem:[#allocation5 + $0x88] sm:$0xff]  ;;  %v863_v51 = vmov 1983009808   ;;  %v171_v53 = vlaneseq }
  0x2a   :  { %v51_v2 = vld [vmem:[#allocation5] sm:$0xff]  ;;  %v661_v3 = vpack.c.bf16 %v68_v1, %v67_v0  ;;  %v52_v4 = vld [vmem:[#allocation5 + $0x8] sm:$0xff]  ;;  %v69_v11 = vld [vmem:[#allocation5 + $0x90] sm:$0xff]  ;;  %v169_v52 = vunpack.c.l.s4 %v863_v51  ;;  %vm865_vm0 = vmmov 0   ;;  %vm241_vm1 = vcmask 130048  }
  0x2b   :  { %v99_v5 = vld [vmem:[#allocation5 + $0x180] sm:$0xff]  ;;  %v100_v6 = vld [vmem:[#allocation5 + $0x188] sm:$0xff]  ;;  %v663_v7 = vpack.c.bf16 %v52_v4, %v51_v2  ;;  %v70_v13 = vld [vmem:[#allocation5 + $0x98] sm:$0xff]  ;;  %vm524_vm2 = vcmask 80896  }
  0x2c   :  { %v693_v8 = vpack.c.bf16 %v100_v6, %v99_v5  ;;  %v83_v9 = vld [vmem:[#allocation5 + $0x100] sm:$0xff]  ;;  %v84_v10 = vld [vmem:[#allocation5 + $0x108] sm:$0xff]  ;;  %662 = vmatprep.subr.bf16.mxu0 %v661_v3  ;;  %v53_v14 = vld [vmem:[#allocation5 + $0x10] sm:$0xff]  ;;  %v665_v16 = vpack.c.bf16 %v70_v13, %v69_v11  ;;  %v170_v2 = vunpack.c.0.s8 %v169_v52  ;;  %v172_v3 = vshrl.u32 %v171_v53, 7 }
  0x2d   :  { %v695_v12 = vpack.c.bf16 %v84_v10, %v83_v9  ;;  %v54_v15 = vld [vmem:[#allocation5 + $0x18] sm:$0xff]  ;;  %664 = vmatpush3.bf16.msra.mxu0 %v663_v7  ;;  %v101_v18 = vld [vmem:[#allocation5 + $0x190] sm:$0xff]  ;;  %v71_v23 = vld [vmem:[#allocation5 + $0xa0] sm:$0xff] }
  0x2e   :  { %694 = vmatprep.subr.bf16.mxu1 %v693_v8  ;;  %v667_v17 = vpack.c.bf16 %v54_v15, %v53_v14  ;;  %v102_v19 = vld [vmem:[#allocation5 + $0x198] sm:$0xff]  ;;  %v85_v20 = vld [vmem:[#allocation5 + $0x110] sm:$0xff]  ;;  %v72_v24 = vld [vmem:[#allocation5 + $0xa8] sm:$0xff]  ;;  %666 = vmatprep.subr.bf16.mxu0 %v665_v16 }
  0x2f   :  { %696 = vmatpush3.bf16.msra.mxu1 %v695_v12  ;;  %v697_v21 = vpack.c.bf16 %v102_v19, %v101_v18  ;;  %v86_v22 = vld [vmem:[#allocation5 + $0x118] sm:$0xff]  ;;  %v669_v26 = vpack.c.bf16 %v72_v24, %v71_v23  ;;  %v55_v27 = vld [vmem:[#allocation5 + $0x20] sm:$0xff]  ;;  %v56_v28 = vld [vmem:[#allocation5 + $0x28] sm:$0xff] }
  0x30   :  { %v699_v25 = vpack.c.bf16 %v86_v22, %v85_v20  ;;  %v103_v29 = vld [vmem:[#allocation5 + $0x1a0] sm:$0xff]  ;;  %v104_v30 = vld [vmem:[#allocation5 + $0x1a8] sm:$0xff]  ;;  %v671_v33 = vpack.c.bf16 %v56_v28, %v55_v27  ;;  %v73_v35 = vld [vmem:[#allocation5 + $0xb0] sm:$0xff] }
  0x31   :  { %698 = vmatprep.subr.bf16.mxu1 %v697_v21  ;;  %v87_v31 = vld [vmem:[#allocation5 + $0x120] sm:$0xff]  ;;  %v88_v32 = vld [vmem:[#allocation5 + $0x128] sm:$0xff]  ;;  %668 = vmatpush3.bf16.msra.mxu0 %v667_v17  ;;  %v701_v34 = vpack.c.bf16 %v104_v30, %v103_v29  ;;  %v74_v36 = vld [vmem:[#allocation5 + $0xb8] sm:$0xff]  ;;  %v914_v21 = vsub.s32 %v170_v2, %v172_v3 }
  0x32   :  { %v57_v37 = vld [vmem:[#allocation5 + $0x30] sm:$0xff]  ;;  %670 = vmatprep.subr.bf16.mxu0 %v669_v26  ;;  %v703_v38 = vpack.c.bf16 %v88_v32, %v87_v31  ;;  %v673_v39 = vpack.c.bf16 %v74_v36, %v73_v35  ;;  %v58_v40 = vld [vmem:[#allocation5 + $0x38] sm:$0xff]  ;;  %v75_v46 = vld [vmem:[#allocation5 + $0xc0] sm:$0xff] }
  0x33   :  { %700 = vmatpush3.bf16.msra.mxu1 %v699_v25  ;;  %v105_v41 = vld [vmem:[#allocation5 + $0x1b0] sm:$0xff]  ;;  %v106_v42 = vld [vmem:[#allocation5 + $0x1b8] sm:$0xff]  ;;  %v76_v47 = vld [vmem:[#allocation5 + $0xc8] sm:$0xff]  ;;  %v675_v48 = vpack.c.bf16 %v58_v40, %v57_v37 }
  0x34   :  { %702 = vmatprep.subr.bf16.mxu1 %v701_v34  ;;  %v705_v43 = vpack.c.bf16 %v106_v42, %v105_v41  ;;  %v89_v44 = vld [vmem:[#allocation5 + $0x130] sm:$0xff]  ;;  %v90_v45 = vld [vmem:[#allocation5 + $0x138] sm:$0xff]  ;;  %v107_v49 = vld [vmem:[#allocation5 + $0x1c0] sm:$0xff]  ;;  %v677_v55 = vpack.c.bf16 %v76_v47, %v75_v46 }
  0x35   :  { %672 = vmatpush3.bf16.msra.mxu0 %v671_v33  ;;  %v108_v50 = vld [vmem:[#allocation5 + $0x1c8] sm:$0xff]  ;;  %v707_v54 = vpack.c.bf16 %v90_v45, %v89_v44  ;;  %v59_v56 = vld [vmem:[#allocation5 + $0x40] sm:$0xff]  ;;  %v77_v61 = vld [vmem:[#allocation5 + $0xd0] sm:$0xff] }
  0x36   :  { %674 = vmatprep.subr.bf16.mxu0 %v673_v39  ;;  %v60_v57 = vld [vmem:[#allocation5 + $0x48] sm:$0xff]  ;;  %v91_v58 = vld [vmem:[#allocation5 + $0x140] sm:$0xff]  ;;  %v709_v59 = vpack.c.bf16 %v108_v50, %v107_v49  ;;  %v78_v62 = vld [vmem:[#allocation5 + $0xd8] sm:$0xff] }
  0x37   :  { %704 = vmatpush3.bf16.msra.mxu1 %v703_v38  ;;  %v92_v60 = vld [vmem:[#allocation5 + $0x148] sm:$0xff]  ;;  %v109_v63 = vld [vmem:[#allocation5 + $0x1d0] sm:$0xff]  ;;  %v110_v0 = vld [vmem:[#allocation5 + $0x1d8] sm:$0xff]  ;;  %v679_v1 = vpack.c.bf16 %v60_v57, %v59_v56  ;;  %v681_v5 = vpack.c.bf16 %v78_v62, %v77_v61 }
  0x38   :  { %706 = vmatprep.subr.bf16.mxu1 %v705_v43  ;;  %v711_v4 = vpack.c.bf16 %v92_v60, %v91_v58  ;;  %v61_v6 = vld [vmem:[#allocation5 + $0x50] sm:$0xff]  ;;  %v62_v7 = vld [vmem:[#allocation5 + $0x58] sm:$0xff]  ;;  %v713_v9 = vpack.c.bf16 %v110_v0, %v109_v63  ;;  %v79_v11 = vld [vmem:[#allocation5 + $0xe0] sm:$0xff]  ;;  %v864_v63 = vmov 0.0|0.0  }
  0x39   :  { %676 = vmatpush3.bf16.msra.mxu0 %v675_v48  ;;  %v93_v8 = vld [vmem:[#allocation5 + $0x150] sm:$0xff]  ;;  %v94_v10 = vld [vmem:[#allocation5 + $0x158] sm:$0xff]  ;;  %v80_v12 = vld [vmem:[#allocation5 + $0xe8] sm:$0xff]  ;;  %v683_v17 = vpack.c.bf16 %v62_v7, %v61_v6 }
  0x3a   :  { %678 = vmatprep.subr.bf16.mxu0 %v677_v55  ;;  %v63_v13 = vld [vmem:[#allocation5 + $0x60] sm:$0xff]  ;;  %v64_v14 = vld [vmem:[#allocation5 + $0x68] sm:$0xff]  ;;  %v81_v20 = vld [vmem:[#allocation5 + $0xf0] sm:$0xff]  ;;  %v715_v22 = vpack.c.bf16 %v94_v10, %v93_v8  ;;  %v685_v23 = vpack.c.bf16 %v80_v12, %v79_v11  ;;  %v866_v10 = vmov 0.0  }
  0x3b   :  { %708 = vmatpush3.bf16.msra.mxu1 %v707_v54  ;;  %v111_v15 = vld [vmem:[#allocation5 + $0x1e0] sm:$0xff]  ;;  %v112_v16 = vld [vmem:[#allocation5 + $0x1e8] sm:$0xff]  ;;  %v82_v25 = vld [vmem:[#allocation5 + $0xf8] sm:$0xff]  ;;  %v687_v30 = vpack.c.bf16 %v64_v14, %v63_v13 }
  0x3c   :  { %710 = vmatprep.subr.bf16.mxu1 %v709_v59  ;;  %v95_v18 = vld [vmem:[#allocation5 + $0x160] sm:$0xff]  ;;  %v96_v19 = vld [vmem:[#allocation5 + $0x168] sm:$0xff]  ;;  %v717_v24 = vpack.c.bf16 %v112_v16, %v111_v15  ;;  %v113_v28 = vld [vmem:[#allocation5 + $0x1f0] sm:$0xff]  ;;  %v689_v36 = vpack.c.bf16 %v82_v25, %v81_v20 }
  0x3d   :  { %680 = vmatpush3.bf16.msra.mxu0 %v679_v1  ;;  %v773_v26 = vld [vmem:[#allocation2] ss:$14 sps:$4 sm:$0xff]   ;;  %v775_v27 = vld [vmem:[#allocation2 + $0x1c] ss:$14 sps:$4 sm:$0xff]   ;;  %v777_v33 = vld [vmem:[#allocation2 + $0x4] ss:$14 sps:$4 sm:$0xff]   ;;  %v719_v35 = vpack.c.bf16 %v96_v19, %v95_v18 }
  0x3e   :  { %682 = vmatprep.subr.bf16.mxu0 %v681_v5  ;;  %v114_v29 = vld [vmem:[#allocation5 + $0x1f8] sm:$0xff]  ;;  %v174_v31 = vrot.slane %v773_v26, %v914_v21  ;;  %v188_v32 = vrot.slane %v775_v27, %v914_v21  ;;  %v65_v37 = vld [vmem:[#allocation5 + $0x70] sm:$0xff]  ;;  %v131_v43 = vld [vmem:[#allocation5 + $0x280] sm:$0xff]  ;;  %v181_v45 = vrot.slane %v777_v33, %v914_v21 }
  0x3f   :  { %712 = vmatpush3.bf16.msra.mxu1 %v711_v4  ;;  %v778_v34 = vld [vmem:[#allocation2 + $0x20] ss:$14 sps:$4 sm:$0xff]   ;;  %v721_v40 = vpack.c.bf16 %v114_v29, %v113_v28  ;;  %v115_v51 = vld [vmem:[#allocation5 + $0x200] sm:$0xff]  ;;  %v782_v7 = vld [vmem:[#allocation2 + $0x24] ss:$14 sps:$4 sm:$0xff]  }
  0x40   :  { %714 = vmatprep.subr.bf16.mxu1 %v713_v9  ;;  %v66_v38 = vld [vmem:[#allocation5 + $0x78] sm:$0xff]  ;;  %v97_v39 = vld [vmem:[#allocation5 + $0x170] sm:$0xff]  ;;  %v197_v41 = vcombine.high %v174_v31, %v188_v32  ;;  %v132_v44 = vld [vmem:[#allocation5 + $0x288] sm:$0xff]  ;;  %v195_v46 = vrot.slane %v778_v34, %v914_v21  ;;  %v196_v55 = vcombine.low %v174_v31, %v188_v32  ;;  %v224_v16 = vrot.slane %v782_v7, %v914_v21 }
  0x41   :  { %684 = vmatpush3.bf16.msra.mxu0 %v683_v17  ;;  %v98_v42 = vld [vmem:[#allocation5 + $0x178] sm:$0xff]  ;;  %v691_v47 = vpack.c.bf16 %v66_v38, %v65_v37  ;;  %v725_v50 = vpack.c.bf16 %v132_v44, %v131_v43  ;;  %v116_v52 = vld [vmem:[#allocation5 + $0x208] sm:$0xff]  ;;  %v133_v53 = vld [vmem:[#allocation5 + $0x290] sm:$0xff] }
  0x42   :  { %686 = vmatprep.subr.bf16.mxu0 %v685_v23  ;;  %308 = vmatprep.mubr.f32.mxu0 %v197_v41  ;;  %v199_v48 = vcombine.high %v181_v45, %v195_v46  ;;  %v723_v49 = vpack.c.bf16 %v98_v42, %v97_v39  ;;  %v134_v54 = vld [vmem:[#allocation5 + $0x298] sm:$0xff]  ;;  %v727_v56 = vpack.c.bf16 %v116_v52, %v115_v51  ;;  %v117_v59 = vld [vmem:[#allocation5 + $0x210] sm:$0xff]  ;;  %v135_v61 = vld [vmem:[#allocation5 + $0x2a0] sm:$0xff] }
  0x43   :  { %716 = vmatpush3.bf16.msra.mxu1 %v715_v22  ;;  %v198_v57 = vcombine.low %v181_v45, %v195_v46  ;;  %v729_v58 = vpack.c.bf16 %v134_v54, %v133_v53  ;;  %v118_v60 = vld [vmem:[#allocation5 + $0x218] sm:$0xff]  ;;  %v136_v62 = vld [vmem:[#allocation5 + $0x2a8] sm:$0xff]  ;;  %v119_v0 = vld [vmem:[#allocation5 + $0x220] sm:$0xff] }
  0x44   :  { %718 = vmatprep.subr.bf16.mxu1 %v717_v24  ;;  %378 = vmatprep.mubr.f32.mxu1 %v199_v48  ;;  %v120_v1 = vld [vmem:[#allocation5 + $0x228] sm:$0xff]  ;;  %v731_v2 = vpack.c.bf16 %v118_v60, %v117_v59  ;;  %v779_v3 = vld [vmem:[#allocation2 + $0x8] ss:$14 sps:$4 sm:$0xff]   ;;  %v781_v4 = vld [vmem:[#allocation2 + $0xc] ss:$14 sps:$4 sm:$0x33]   ;;  %v733_v6 = vpack.c.bf16 %v136_v62, %v135_v61 }
  0x45   :  { %688 = vmatpush3.bf16.msra.mxu0 %v687_v30  ;;  %v147_v5 = vld [vmem:[#allocation5 + $0x300] sm:$0xff]  ;;  %v784_v8 = vld [vmem:[#allocation2 + $0x28] ss:$14 sps:$4 sm:$0x33]   ;;  %v148_v9 = vld [vmem:[#allocation5 + $0x308] sm:$0xff]  ;;  %v210_v13 = vrot.slane %v779_v3, %v914_v21  ;;  %v217_v14 = vrot.slane %v781_v4, %v914_v21  ;;  %v735_v18 = vpack.c.bf16 %v120_v1, %v119_v0 }
  0x46   :  { %690 = vmatprep.subr.bf16.mxu0 %v689_v36  ;;  %v137_v11 = vld [vmem:[#allocation5 + $0x2b0] sm:$0xff]  ;;  %v138_v12 = vld [vmem:[#allocation5 + $0x2b8] sm:$0xff]  ;;  %v758_v15 = vpack.c.bf16 %v148_v9, %v147_v5  ;;  %v231_v17 = vrot.slane %v784_v8, %v914_v21  ;;  %v139_v25 = vld [vmem:[#allocation5 + $0x2c0] sm:$0xff] }
  0x47   :  { %720 = vmatpush3.bf16.msra.mxu1 %v719_v35  ;;  %v737_v19 = vpack.c.bf16 %v138_v12, %v137_v11  ;;  %v121_v20 = vld [vmem:[#allocation5 + $0x230] sm:$0xff]  ;;  %v122_v22 = vld [vmem:[#allocation5 + $0x238] sm:$0xff]  ;;  %v233_v23 = vcombine.high %v210_v13, %v224_v16  ;;  %v140_v26 = vld [vmem:[#allocation5 + $0x2c8] sm:$0xff] }
  0x48   :  { %722 = vmatprep.subr.bf16.mxu1 %v721_v40  ;;  %v234_v24 = vcombine.low %v217_v14, %v231_v17  ;;  %v739_v27 = vpack.c.bf16 %v122_v22, %v121_v20  ;;  %v741_v28 = vpack.c.bf16 %v140_v26, %v139_v25  ;;  %v123_v29 = vld [vmem:[#allocation5 + $0x240] sm:$0xff]  ;;  %v124_v21 = vld [vmem:[#allocation5 + $0x248] sm:$0xff]  ;;  %v141_v30 = vld [vmem:[#allocation5 + $0x2d0] sm:$0xff] }
  0x49   :  { %692 = vmatpush3.bf16.msra.mxu0 %v691_v47  ;;  %v142_v31 = vld [vmem:[#allocation5 + $0x2d8] sm:$0xff]  ;;  %v743_v32 = vpack.c.bf16 %v124_v21, %v123_v29  ;;  %v125_v34 = vld [vmem:[#allocation5 + $0x250] sm:$0xff]  ;;  %v143_v36 = vld [vmem:[#allocation5 + $0x2e0] sm:$0xff] }
  0x4a   :  { %726 = vmatprep.subr.bf16.mxu0 %v725_v50  ;;  %v745_v33 = vpack.c.bf16 %v142_v31, %v141_v30  ;;  %v126_v35 = vld [vmem:[#allocation5 + $0x258] sm:$0xff]  ;;  %v144_v37 = vld [vmem:[#allocation5 + $0x2e8] sm:$0xff]  ;;  %v127_v40 = vld [vmem:[#allocation5 + $0x260] sm:$0xff] }
  0x4b   :  { %724 = vmatpush3.bf16.msra.mxu1 %v723_v49  ;;  %v747_v38 = vpack.c.bf16 %v126_v35, %v125_v34  ;;  %v749_v39 = vpack.c.bf16 %v144_v37, %v143_v36  ;;  %v128_v41 = vld [vmem:[#allocation5 + $0x268] sm:$0xff]  ;;  %v145_v42 = vld [vmem:[#allocation5 + $0x2f0] sm:$0xff]  ;;  %v146_v43 = vld [vmem:[#allocation5 + $0x2f8] sm:$0xff]  ;;  %v232_v49 = vcombine.low %v210_v13, %v224_v16 }
  0x4c   :  { %757 = vmatprep.subr.bf16.mxu1 %v864_v63  ;;  %309 = vmatmul.mubr.f32.vlgmr.msra.gmra.mrb[0].mxu0 %v196_v55  ;;  %v751_v44 = vpack.c.bf16 %v128_v41, %v127_v40  ;;  %v753_v45 = vpack.c.bf16 %v146_v43, %v145_v42  ;;  %v129_v46 = vld [vmem:[#allocation5 + $0x270] sm:$0xff]  ;;  %v130_v47 = vld [vmem:[#allocation5 + $0x278] sm:$0xff]  ;;  %v544_v51 = vld [vmem:[%s941_s2] ss:$0 sm:$0xff] }
  0x4d   :  { %728 = vmatpush3.bf16.msra.mxu0 %v727_v56  ;;  %448 = vmatprep.mubr.f32.mxu0 %v233_v23  ;;  %v755_v48 = vpack.c.bf16 %v130_v47, %v129_v46 }
  0x4e   :  { %379 = vmatmul.mubr.f32.vlgmr.msra.gmra.mrb[0].mxu1 %v198_v57  ;;  %730 = vmatprep.subr.bf16.mxu0 %v729_v58 }
  0x4f   :  { %658 = vmatprep.mubr.msk.f32.mxu1 %vm865_vm0, %v866_v10  ;;  %759 = vmatpush3.bf16.msra.mxu1 %v758_v15 }
  0x51   :  { %732 = vmatpush3.bf16.msra.mxu0 %v731_v2 }
  0x52   :  { %734 = vmatprep.subr.bf16.mxu0 %v733_v6  ;;  %659 = vmatmul.mubr.msk.f32.vlgmr.msra.gmra.mrb[2].mxu1 %vm241_vm1, %v234_v24 }
  0x55   :  { %736 = vmatpush3.bf16.msra.mxu0 %v735_v18 }
  0x56   :  { %738 = vmatprep.subr.bf16.mxu0 %v737_v19 }
  0x59   :  { %740 = vmatpush3.bf16.msra.mxu0 %v739_v27 }
  0x5a   :  { %742 = vmatprep.subr.bf16.mxu0 %v741_v28 }
  0x5d   :  { %744 = vmatpush3.bf16.msra.mxu0 %v743_v32 }
  0x5e   :  { %746 = vmatprep.subr.bf16.mxu0 %v745_v33 }
  0x61   :  { %748 = vmatpush3.bf16.msra.mxu0 %v747_v38 }
  0x62   :  { %750 = vmatprep.subr.bf16.mxu0 %v749_v39 }
  0x65   :  { %752 = vmatpush3.bf16.msra.mxu0 %v751_v44 }
  0x66   :  { %754 = vmatprep.subr.bf16.mxu0 %v753_v45 }
  0x69   :  { %756 = vmatpush3.bf16.msra.mxu0 %v755_v48 }
  0x6c   :  { %449 = vmatmul.mubr.f32.vlgmr.msra.gmra.mrb[2].mxu0 %v232_v49 }
 0x11f   :  { %v578_v50 = vpop.f32.mrb[0].mxu0 }
 0x120   :  { %v579_v52 = vpop.f32.mrb[1].mxu0 }
 0x121   :  { %v613_v53 = vpop.f32.mrb[0].mxu1  ;;  %v580_v54 = vadd.f32 %v579_v52, %v578_v50 }
 0x122   :  { %v614_v55 = vpop.f32.mrb[1].mxu1 }
 0x123   :  { %v615_v56 = vadd.f32 %v614_v55, %v613_v53  ;;  %v311_v57 = vadd.f32 %v580_v54, %v544_v51 }
 0x125   :  { %v381_v58 = vadd.f32 %v615_v56, %v311_v57  ;;  %v520_v59 = vpop.f32.mrb[2].mxu1 }
 0x126   :  { %v660_v60 = vpop.f32.mrb[3].mxu1 }
 0x13f   :  { %v648_v61 = vpop.f32.mrb[2].mxu0 }
 0x140   :  { %v649_v62 = vpop.f32.mrb[3].mxu0 }
 0x141   :  { %v650_v63 = vadd.f32 %v649_v62, %v648_v61 }
 0x143   :  { %v451_v0 = vadd.f32 %v650_v63, %v381_v58 }
 0x145   :  { %v521_v1 = vadd.f32 %v520_v59, %v451_v0 }
 0x147   :  { %525 = vst.msk [vmem:[#allocation7] sm:$0xff] %vm524_vm2, %v521_v1 }
 0x148   :  { %530 = vsyncadd [#allocation4], 96  ;;  %s867_s14 = smov [#allocation7]  }
 0x149   :  { %s531_s15 = sshll.u32 %s867_s14, 4  ;;  %s532_s15 = int_to_ptr.vmem [resolvable:$true] %s531_s15 }
 0x14a   :  { %s829_s2 = scalar_lea.vmem %s532_s15, 32  ;;  %s833_s16 = scalar_lea.vmem %s532_s15, 128 }
 0x14b   :  { %p830_p2 = scmp.ne.s32.totalorder %s532_s15, %s829_s2  ;;  %p834_p3 = scmp.lt.s32.totalorder %s532_s15, %s532_s15 }
 0x14c   :  { %p835_p4 = scmp.lt.s32.totalorder %s833_s16, %s829_s2 }
 0x14e   :  { %p836_p5 = por %p835_p4, %p834_p3 }
 0x150   :  { %p837_p6 = pnand %p836_p5, %p830_p2 }
 0x152   :  { %840 = shalt.err (!%p837_p6)
}
 0x153   :  { %s841_s19 = scalar_lea.hbm %s942_s3, 32 }
 0x154   :  { %p842_p7 = scmp.ne.s32.totalorder %s942_s3, %s841_s19  ;;  %p845_p8 = scmp.lt.u32.totalorder %s841_s19, %s942_s3 }
 0x156   :  { %p847_p9 = pnand %p845_p8, %p842_p7 }
 0x158   :  { %850 = shalt.err (!%p847_p9)
}
 0x159   :  { %s868_s24 = smov 32   ;;  %s869_s25 = smov 2  }
 0x15a   :  { %537 = dma.vmem_to_hbm [thread:$0]  %s532_s15, 32, %s942_s3, [#allocation4], %s868_s24, %s868_s24, %s869_s25  }
 0x15b   :  { %855 = dma.done.wait [#allocation4], 128  }
 0x15c   :  { %856 = vsyncadd [#allocation4], 4294967168 }
 0x15d   :  { %541 = vsyncpa [#allocation3], 1 }
 0x15e   :  { %542 = vsyncpa [#allocation6], 1 }
 0x15f   :  { %543 = vsyncpa [#allocation4], 1 }

</bundles_post_ra>
